<compile_context>
chip_gen: v7x
topology: tpu7x:2x2x1
jax: 0.10.0
libtpu: 0.0.40
codegen_flags: <defaults>
</compile_context>

<pallas_src>
import jax
import jax.numpy as jnp
from jax import lax
from jax.experimental import pallas as pl
from jax.experimental.pallas import tpu as pltpu


def _linear_kernel(z_ref, w_ref, b_ref, o_ref):
    # z_ref: [TB, C_in], w_ref: [C_pad, C_in] (PyTorch layout), b_ref: [1, C_pad]
    # Contract z dim 1 with w dim 1 on the MXU (== z @ w.T), f32 accumulation,
    # bias add on the VPU, all inside the kernel.
    acc = lax.dot_general(
        z_ref[...], w_ref[...],
        dimension_numbers=(((1,), (1,)), ((), ())),
        preferred_element_type=jnp.float32,
    )
    o_ref[...] = (acc + b_ref[...]).astype(o_ref.dtype)


def prepare_params(weight, bias):
    """One-time parameter prep (call at init, NOT per forward).

    weight: [C_out, C_in] (PyTorch nn.Linear layout), bias: [C_out].
    Pads C_out up to a multiple of 128 so the kernel's output last dim is
    lane-dense (avoids masked partial stores). Returns (weight_padded,
    bias_row_padded, true_c_out).
    """
    c_out, _ = weight.shape
    c_pad = ((c_out + 127) // 128) * 128
    if c_pad != c_out:
        weight = jnp.pad(weight, ((0, c_pad - c_out), (0, 0)))
        bias = jnp.pad(bias, (0, c_pad - c_out))
    return weight, bias.reshape(1, c_pad), c_out


def _pick_block_b(B, c_in, c_pad, itemsize=4, vmem_budget=24 << 20):
    """Batch tile that keeps double-buffered z/out tiles + resident weight/bias
    well inside the default scoped VMEM (also safe on v7x's 64 MiB physical)."""
    fixed = c_pad * c_in * itemsize + c_pad * itemsize          # weight + bias (resident)
    per_row = 2 * (c_in + c_pad) * itemsize                      # 2 buffers x (z row + out row)
    tb = max(8, (vmem_budget - fixed) // per_row)
    tb = min(tb, B)
    if tb >= 8:
        tb = (tb // 8) * 8                                       # sublane-aligned
    return max(1, int(tb))


def logvar_forward(z, weight_padded, bias_row, c_out, *, block_b=None):
    """z: [B, C_in]; weight_padded: [C_pad, C_in]; bias_row: [1, C_pad].

    Computes z @ W.T + b (PyTorch nn.Linear semantics) and returns [B, c_out].
    """
    B, c_in = z.shape
    c_pad = weight_padded.shape[0]

    if block_b is None:
        block_b = _pick_block_b(B, c_in, c_pad)
    block_b = min(block_b, B)

    grid = (pl.cdiv(B, block_b),)

    out = pl.pallas_call(
        _linear_kernel,
        out_shape=jax.ShapeDtypeStruct((B, c_pad), z.dtype),
        grid=grid,
        in_specs=[
            pl.BlockSpec((block_b, c_in), lambda i: (i, 0)),   # z tile per grid step
            pl.BlockSpec((c_pad, c_in), lambda i: (0, 0)),     # weight: resident / replicated
            pl.BlockSpec((1, c_pad), lambda i: (0, 0)),        # bias row: resident / replicated
        ],
        out_specs=pl.BlockSpec((block_b, c_pad), lambda i: (i, 0)),
        compiler_params=pltpu.CompilerParams(
            dimension_semantics=("parallel",),                 # independent batch tiles -> megacore
        ),
    )(z, weight_padded, bias_row)

    return out[:, :c_out] if c_pad != c_out else out


if __name__ == "__main__":
    latent_channels = 32
    out_channels = 64
    batch = 16

    key = jax.random.PRNGKey(0)
    kz, kw, kb = jax.random.split(key, 3)

    # Deterministic parameter init (mimics nn.Linear's uniform(-1/sqrt(in), 1/sqrt(in))).
    bound = 1.0 / (latent_channels ** 0.5)
    weight = jax.random.uniform(
        kw, (out_channels, latent_channels), jnp.float32, -bound, bound
    )
    bias = jax.random.uniform(kb, (out_channels,), jnp.float32, -bound, bound)

    z = jax.random.normal(kz, (batch, latent_channels), jnp.float32)

    # One-time parameter prep (lane-dense padding), outside the per-call path.
    w_p, b_p, c_out = prepare_params(weight, bias)

    # block_b=8 -> grid=(2,) with "parallel" semantics (exercises tiling / megacore).
    out = logvar_forward(z, w_p, b_p, c_out, block_b=8)
    out = jax.block_until_ready(out)

    # Cross-check against plain JAX reference (PyTorch Linear semantics).
    ref = z @ weight.T + bias
    assert out.shape == (batch, out_channels)
    assert jnp.allclose(out, ref, atol=1e-5, rtol=1e-5)

    print("KERNEL_OK")
</pallas_src>

<mosaic_0001>
module attributes {stable_mosaic.version = 11 : i64} {
  func.func @_linear_kernel(%arg0: i32, %arg1: memref<8x32xf32, #tpu.memory_space<vmem>>, %arg2: memref<128x32xf32, #tpu.memory_space<vmem>>, %arg3: memref<1x128xf32, #tpu.memory_space<vmem>>, %arg4: memref<8x128xf32, #tpu.memory_space<vmem>>) attributes {dimension_semantics = [#tpu.dimension_semantics<parallel>], iteration_bounds = array<i64: 2>, scalar_prefetch = 0 : i64, scratch_operands = 0 : i64, tpu.core_type = #tpu.core_type<tc>, window_params = [{transform_indices = @transform_0, window_bounds = array<i64: 8, 32>}, {pipeline_mode = #tpu.pipeline_mode<synchronous>, transform_indices = @transform_1, window_bounds = array<i64: 128, 32>}, {pipeline_mode = #tpu.pipeline_mode<synchronous>, transform_indices = @transform_2, window_bounds = array<i64: 1, 128>}, {transform_indices = @transform_3, window_bounds = array<i64: 8, 128>}]} {
    %c0 = arith.constant 0 : index
    %c0_0 = arith.constant 0 : index
    %0 = vector.load %arg1[%c0, %c0_0] : memref<8x32xf32, #tpu.memory_space<vmem>>, vector<8x32xf32>
    %c0_1 = arith.constant 0 : index
    %c0_2 = arith.constant 0 : index
    %1 = vector.load %arg2[%c0_1, %c0_2] : memref<128x32xf32, #tpu.memory_space<vmem>>, vector<128x32xf32>
    %cst = arith.constant dense<0.000000e+00> : vector<8x128xf32>
    %2 = tpu.matmul %0, %1, %cst {dimension_numbers = #tpu.dot_dimension_numbers<[1], [1], [0], [0], [0, 0, 1, 0], [], []>} : vector<8x32xf32>, vector<128x32xf32>, vector<8x128xf32> -> vector<8x128xf32>
    %c0_3 = arith.constant 0 : index
    %c0_4 = arith.constant 0 : index
    %3 = vector.load %arg3[%c0_3, %c0_4] : memref<1x128xf32, #tpu.memory_space<vmem>>, vector<1x128xf32>
    %4 = vector.broadcast %3 : vector<1x128xf32> to vector<8x128xf32>
    %5 = arith.addf %2, %4 : vector<8x128xf32>
    %c0_5 = arith.constant 0 : index
    %c0_6 = arith.constant 0 : index
    %6 = vector.load %arg4[%c0_5, %c0_6] : memref<8x128xf32, #tpu.memory_space<vmem>>, vector<8x128xf32>
    tpu.vector_store %arg4[%c0_5, %c0_6], %5 {strides = array<i32>} : memref<8x128xf32, #tpu.memory_space<vmem>>, vector<8x128xf32>,
    return
  }
  func.func @transform_0(%arg0: i32) -> (i32, i32) {
    %c0_i32 = arith.constant 0 : i32
    %c0_i32_0 = arith.constant 0 : i32
    return %arg0, %c0_i32 : i32, i32
  }
  func.func @transform_1(%arg0: i32) -> (i32, i32) {
    %c0_i32 = arith.constant 0 : i32
    %c0_i32_0 = arith.constant 0 : i32
    %c0_i32_1 = arith.constant 0 : i32
    return %c0_i32, %c0_i32_0 : i32, i32
  }
  func.func @transform_2(%arg0: i32) -> (i32, i32) {
    %c0_i32 = arith.constant 0 : i32
    %c0_i32_0 = arith.constant 0 : i32
    %c0_i32_1 = arith.constant 0 : i32
    return %c0_i32, %c0_i32_0 : i32, i32
  }
  func.func @transform_3(%arg0: i32) -> (i32, i32) {
    %c0_i32 = arith.constant 0 : i32
    %c0_i32_0 = arith.constant 0 : i32
    return %arg0, %c0_i32 : i32, i32
  }
}

</mosaic_0001>

<bundles_post_ra>
// kernel: tpu_custom_call.1
= control target key start
LH: loop header
LB: loop body
LE: loop exit
PB: predicated region body
PF: predicated region fallthrough
CT: control target
= control target key end

     0   :  { %8 = vsyncpa [#allocation3], 0  ;;  %s802_s0 = inlined_call_operand.vmem [shape: f32[16,32], index: 0, kind: input, shape index: {}]   ;;  %s803_s1 = inlined_call_operand.vmem [shape: f32[128,32], index: 1, kind: input, shape index: {}]   ;;  %s804_s2 = inlined_call_operand.vmem [shape: f32[1,128], index: 2, kind: input, shape index: {}]   ;;  %s805_s3 = inlined_call_operand.hbm [shape: f32[16,128], index: 3, kind: output, shape index: {}]  }
   0x1   :  { %10 = vsyncpa [#allocation3 + $0x1], 0  ;;  %s628_s12 = smov 0   ;;  %s630_s13 = smov 0  }
   0x2   :  { %s632_s14 = smov 0   ;;  %s634_s15 = smov 0  }
   0x3 LB: > { %s649_s16 = sadd.s32 4294967295, %s602_s15   ;;  %s386_s17 = sadd.s32 4294967294, %s602_s15   ;;  %s602_s15 = sphi %s634_s15, %s813_s15   ;;  %s598_s14 = sphi %s632_s14, %s812_s14   ;;  %s594_s13 = sphi %s630_s13, %s811_s13   ;;  %s590_s12 = sphi %s628_s12, %s810_s12  }
   0x4   : > { %s653_s18 = sadd.s32 1, %s602_s15   ;;  %s91_s19 = sadd.s32 1, %s598_s14 }
   0x5   : > { %s88_s20 = ssub.s32 %s602_s15, %s653_s18  ;;  %p101_p0 = scmp.ne.s32.totalorder %s598_s14, %s594_s13 }
   0x6   : > { %p89_p1 = scmp.eq.s32.totalorder %s88_s20, 0  ;;  %p102_p2 = scmp.eq.s32.totalorder %s649_s16, 1 }
   0x7   : > { %p107_p3 = scmp.ne.s32.totalorder %s594_s13, %s590_s12  ;;  %p108_p4 = scmp.eq.s32.totalorder %s386_s17, 1 }
   0x8   : > { %s664_s21 = scalar_select %p89_p1, %s598_s14, %s91_s19  }
   0x9   : > { %p666_p5 = por %p102_p2, %p101_p0  ;;  %p670_p6 = por %p108_p4, %p107_p3 }
   0xa   : > { %p389_p7 = scmp.ge.s32.totalorder %s602_s15, 1  ;;  %p139_p8 = scmp.lt.s32.totalorder %s602_s15, 3 }
   0xc   : > { %p140_p9 = pnand %p389_p7, %p139_p8 }
   0xd   : > { %v167_v0 = vld [vmem:[%s803_s1] sm:$0xff] (!%p140_p9)  ;;  %v168_v1 = vld [vmem:[%s803_s1 + $0x8] sm:$0xff] (!%p140_p9)  ;;  %vm190_vm0 = vcmask (!%p140_p9), 261120   ;;  %v604_v2 = vmov (!%p140_p9), 0.0|0.0   ;;  %vm605_vm2 = vmmov (!%p140_p9), 0   ;;  %v606_v5 = vmov (!%p140_p9), 0.0  }
   0xe   : > { %143 = sbr.rel (%p140_p9) target bundleno = 307 (0x133), region = 32  ;;  %466 = vmatprep.subr.bf16.mxu0 (!%p140_p9), %v604_v2  ;;  %v467_v3 = vpack.c.bf16 (!%p140_p9), %v168_v1, %v167_v0  ;;  %vm684_vm1 = vmpackc.low (!%p140_p9), %vm190_vm0, %vm190_vm0  ;;  %463 = vmatprep.mubr.msk.f32.mxu0 (!%p140_p9), %vm605_vm2, %v606_v5  ;;  %v169_v6 = vld [vmem:[%s803_s1 + $0x10] sm:$0xff] (!%p140_p9)  ;;  %v170_v7 = vld [vmem:[%s803_s1 + $0x18] sm:$0xff] (!%p140_p9)  ;;  %p162_p10 = scmp.lt.s32.totalorder (!%p140_p9), %s649_s16, 1 }
   0xf   : > { %v471_v8 = vpack.c.bf16 (!%p140_p9), %v170_v7, %v169_v6  ;;  %v171_v9 = vld [vmem:[%s803_s1 + $0x20] sm:$0xff] (!%p140_p9)  ;;  %v172_v10 = vld [vmem:[%s803_s1 + $0x28] sm:$0xff] (!%p140_p9)  ;;  %v173_v12 = vld [vmem:[%s803_s1 + $0x30] sm:$0xff] (!%p140_p9)  ;;  %s159_s25 = sand.u32 (!%p140_p9), 1, %s594_s13   ;;  %s411_s29 = sshll.u32 (!%p140_p9), %s649_s16, 7 }
  0x10   : > { %469 = vmatpush3.bf16.xpose.msk.msra.mxu0 (!%p140_p9), %vm684_vm1, %v467_v3  ;;  %v475_v11 = vpack.c.bf16 (!%p140_p9), %v172_v10, %v171_v9  ;;  %v174_v13 = vld [vmem:[%s803_s1 + $0x38] sm:$0xff] (!%p140_p9)  ;;  %v175_v15 = vld [vmem:[%s803_s1 + $0x40] sm:$0xff] (!%p140_p9)  ;;  %v176_v16 = vld [vmem:[%s803_s1 + $0x48] sm:$0xff] (!%p140_p9)  ;;  %s390_s26 = sshll.u32 (!%p140_p9), %s159_s25, 3  ;;  %s760_s7 = scalar_lea.hbm (!%p140_p9), %s805_s3, %s411_s29 }
  0x11   : > { %470 = vmatprep.subr.bf16.mxu0 (!%p140_p9), %v604_v2  ;;  %v479_v14 = vpack.c.bf16 (!%p140_p9), %v174_v13, %v173_v12  ;;  %v483_v17 = vpack.c.bf16 (!%p140_p9), %v176_v16, %v175_v15  ;;  %v177_v18 = vld [vmem:[%s803_s1 + $0x50] sm:$0xff] (!%p140_p9)  ;;  %v178_v19 = vld [vmem:[%s803_s1 + $0x58] sm:$0xff] (!%p140_p9)  ;;  %v179_v21 = vld [vmem:[%s803_s1 + $0x60] sm:$0xff] (!%p140_p9)  ;;  %s161_s30 = scalar_lea.vmem (!%p140_p9), [#allocation2], %s390_s26  ;;  %s314_s8 = scalar_lea.sflag (!%p140_p9), [#allocation3], %s159_s25 }
  0x12   : > { %v487_v20 = vpack.c.bf16 (!%p140_p9), %v178_v19, %v177_v18  ;;  %v180_v22 = vld [vmem:[%s803_s1 + $0x68] sm:$0xff] (!%p140_p9)  ;;  %v181_v24 = vld [vmem:[%s803_s1 + $0x70] sm:$0xff] (!%p140_p9)  ;;  %v182_v25 = vld [vmem:[%s803_s1 + $0x78] sm:$0xff] (!%p140_p9)  ;;  %s327_s4 = sshll.u32 (!%p140_p9), %s161_s30, 4  ;;  %s762_s4 = int_to_ptr.vmem [resolvable:$true] %s327_s4 }
  0x13   : > { %v491_v23 = vpack.c.bf16 (!%p140_p9), %v180_v22, %v179_v21  ;;  %v495_v26 = vpack.c.bf16 (!%p140_p9), %v182_v25, %v181_v24  ;;  %v392_v28 = vld [vmem:[%s804_s2] ss:$0 sm:$0xff] (!%p140_p9)  ;;  %s540_s9 = scalar_lea.vmem (!%p140_p9), %s762_s4, 128 }
  0x14   : > { %p541_p11 = scmp.ne.s32.totalorder (!%p140_p9), %s762_s4, %s540_s9 }
  0x15   : > { %s163_s11 = scalar_select %p162_p10, %s649_s16, 1 }
  0x16   : > { %p542_p12 = pnand %p541_p11, %p666_p5  ;;  %s607_s16 = smov [#allocation2]  }
  0x17   : > { %s391_s17 = sshll.u32 %s163_s11, 3  ;;  %s544_s10 = sshll.u32 %s607_s16, 4  ;;  %s545_s10 = int_to_ptr.vmem [resolvable:$false] %s544_s10 }
  0x18   : > { %473 = vmatpush3.bf16.xpose.msk.msra.mxu0 %vm684_vm1, %v471_v8  ;;  %s165_s24 = scalar_lea.vmem %s802_s0, %s391_s17  ;;  %p543_p13 = pneg %p542_p12 }
  0x19   : > { %474 = vmatprep.subr.bf16.mxu0 %v604_v2  ;;  %v166_v27 = vld [vmem:[%s165_s24] sm:$0xff]  ;;  %s546_s11 = scalar_lea.vmem %s545_s10, 256  ;;  %p547_p0 = scmp.lt.s32.totalorder %s762_s4, %s545_s10 }
  0x1a   : > { %p548_p1 = scmp.lt.s32.totalorder %s546_s11, %s540_s9 }
  0x1c   : > { %p549_p2 = por %p548_p1, %p547_p0 }
  0x1e   : > { %p550_p3 = pnand %p549_p2, %p543_p13 }
  0x20   : > { %477 = vmatpush3.bf16.xpose.msk.msra.mxu0 %vm684_vm1, %v475_v11 }
  0x21   : > { %478 = vmatprep.subr.bf16.mxu0 %v604_v2 }
  0x28   : > { %481 = vmatpush3.bf16.xpose.msk.msra.mxu0 %vm684_vm1, %v479_v14 }
  0x29   : > { %482 = vmatprep.subr.bf16.mxu0 %v604_v2 }
  0x30   : > { %485 = vmatpush3.bf16.xpose.msk.msra.mxu0 %vm684_vm1, %v483_v17 }
  0x31   : > { %486 = vmatprep.subr.bf16.mxu0 %v604_v2 }
  0x38   : > { %489 = vmatpush3.bf16.xpose.msk.msra.mxu0 %vm684_vm1, %v487_v20 }
  0x39   : > { %490 = vmatprep.subr.bf16.mxu0 %v604_v2 }
  0x40   : > { %493 = vmatpush3.bf16.xpose.msk.msra.mxu0 %vm684_vm1, %v491_v23 }
  0x41   : > { %494 = vmatprep.subr.bf16.mxu0 %v604_v2 }
  0x48   : > { %497 = vmatpush3.bf16.xpose.msk.msra.mxu0 %vm684_vm1, %v495_v26 }
  0x4f   : > { %464 = vmatmul.mubr.msk.f32.vlgmr.msra.gmra.mrb[0].mxu0 %vm190_vm0, %v166_v27 }
 0x122   : > { %v308_v29 = vpop.f32.mrb[0].mxu0 }
 0x123   : > { %v309_v30 = vadd.f32 %v392_v28, %v308_v29  ;;  %v465_v31 = vpop.f32.mrb[1].mxu0 }
 0x125   : > { %312 = vst [vmem:[%s161_s30] sm:$0xff] %v309_v30 }
 0x126   : > { %553 = shalt.err (!%p550_p3)
}
 0x127   : > { %s554_s17 = scalar_lea.hbm %s760_s7, 128  ;;  %s558_s24 = scalar_lea.hbm %s805_s3, 256 }
 0x128   : > { %p555_p4 = scmp.ne.s32.totalorder %s760_s7, %s554_s17  ;;  %p559_p9 = scmp.lt.u32.totalorder %s760_s7, %s805_s3 }
 0x129   : > { %p560_p10 = scmp.lt.u32.totalorder %s558_s24, %s554_s17  ;;  %p562_p12 = scmp.lt.u32.totalorder %s554_s17, %s760_s7 }
 0x12a   : > { %p556_p7 = pnand %p555_p4, %p666_p5 }
 0x12b   : > { %p561_p11 = por %p560_p10, %p559_p9 }
 0x12c   : > { %p557_p8 = pneg %p556_p7 }
 0x12d   : > { %p563_p13 = por %p562_p12, %p561_p11 }
 0x12f   : > { %p564_p0 = pnand %p563_p13, %p557_p8 }
 0x131   : > { %567 = shalt.err (!%p564_p0)
}
 0x132   : > { %498 = dma.vmem_to_hbm [thread:$0]  (%p666_p5), %s762_s4, 128, %s760_s7, %s314_s8  }
 0x133 PF: > { %p504_p1 = scmp.ge.s32.totalorder %s602_s15, 2  ;;  %s339_s27 = sand.u32 1, %s590_s12  }
 0x134   : > { %s340_s28 = scalar_lea.sflag [#allocation3], %s339_s27 }
 0x135   : > { %p501_p2 = pnand %p504_p1, %p670_p6 }
 0x137   : > { %585 = dma.done.wait (!%p501_p2), %s340_s28, 128  }
 0x138   : > { %587 = vsyncadd (!%p501_p2), %s340_s28, 4294967168  ;;  %p13_p3 = scmp.ge.s32.totalorder %s653_s18, 4   ;;  %s810_s12 = smov %s594_s13 }
 0x139   : > { %s811_s13 = smov %s598_s14  ;;  %s812_s14 = smov %s664_s21 }
 0x13a   : > { %s813_s15 = smov %s653_s18  ;;  %15 = sbr.rel (!%p13_p3) target bundleno = 3 (0x3), region = 67 }
 0x141   :  { %345 = vsyncpa [#allocation3], 1 }
 0x142   :  { %347 = vsyncpa [#allocation3 + $0x1], 1 }

</bundles_post_ra>
